<compile_context>
chip_gen: v7x
topology: tpu7x:2x2x1
jax: 0.10.0
libtpu: 0.0.40
codegen_flags: <defaults>
</compile_context>

<pallas_src>
import functools

import jax
import jax.numpy as jnp
from jax import lax
from jax.experimental import pallas as pl
from jax.experimental.pallas import tpu as pltpu


def _repulsion_kernel(x_ref, sq_ref, out_ref, *, min_distance, block_rows):
    """One (TM, N_pad) slab of pairwise violations, partial-summed."""
    i = pl.program_id(0)
    r0 = pl.multiple_of(i * block_rows, block_rows)

    xi = x_ref[pl.ds(r0, block_rows), :]               # (TM, Dp) this row block
    x_all = x_ref[...]                                 # (Np, Dp) all points (resident)

    sq_i = jnp.sum(xi * xi, axis=-1, keepdims=True)    # (TM, 1) row squared norms
    gram = lax.dot_general(                            # (TM, Np) on the MXU, no x.T
        xi, x_all,
        dimension_numbers=(((1,), (1,)), ((), ())),
        preferred_element_type=jnp.float32,
    )
    d2 = jnp.maximum(sq_i + sq_ref[...] - 2.0 * gram, 0.0)   # clamp fp noise
    d = jnp.sqrt(d2)
    viol = jnp.maximum(min_distance - d, 0.0)          # relu(min_distance - d)

    # Single compare for the diagonal; padding pairs never violate (sentinels).
    tm, np_ = viol.shape
    row = lax.broadcasted_iota(jnp.int32, (tm, np_), 0) + i * block_rows
    col = lax.broadcasted_iota(jnp.int32, (tm, np_), 1)
    viol = jnp.where(row == col, 0.0, viol)

    out_ref[...] = jnp.full(out_ref.shape, jnp.sum(viol), dtype=jnp.float32)


def repulsion_loss(positions, min_distance=5.0, block_rows=256):
    """positions: (N, D) float array. Returns scalar loss (matches PyTorch)."""
    positions = jnp.asarray(positions, jnp.float32)
    n, d = positions.shape
    md = float(min_distance)

    def _round_up(v, m):
        return int(pl.cdiv(v, m) * m)

    # Geometry: rows padded to a multiple of the row-block size TM (itself a
    # multiple of 8); coords padded only to a multiple of 8 lanes.
    n8 = _round_up(n, 8)
    d_pad = _round_up(max(d, 1), 8)

    # Cap TM so ~4 live (TM, N_pad) f32 slabs stay under an ~8 MiB VMEM budget.
    slab_budget = 8 * 1024 * 1024
    tm_cap = max(8, (slab_budget // (16 * n8)) // 8 * 8)
    tm = max(8, min(_round_up(min(int(block_rows), n8), 8), tm_cap))
    n_pad = _round_up(n8, tm)
    n_extra = n_pad - n
    n_blocks = n_pad // tm

    # Sentinel padding: padded points sit on a far-away line so every
    # (pad, real) and (pad, pad) pair is well beyond min_distance -> no mask.
    x = jnp.zeros((n_pad, d_pad), jnp.float32)
    x = x.at[:n, :d].set(positions)
    if n_extra > 0:
        span = 4.0 * md + 4.0
        max_abs = jnp.max(jnp.abs(positions))
        sentinel = max_abs + span * (1.0 + jnp.arange(n_extra, dtype=jnp.float32))
        x = x.at[n:, 0].set(sentinel)

    # Column squared norms, hoisted out of the grid loop.
    sq_all = jnp.sum(x * x, axis=-1)[None, :]          # (1, n_pad)

    kernel = functools.partial(
        _repulsion_kernel, min_distance=md, block_rows=tm
    )

    out = pl.pallas_call(
        kernel,
        out_shape=jax.ShapeDtypeStruct((n_blocks, 8, 128), jnp.float32),
        grid=(n_blocks,),
        in_specs=[
            pl.BlockSpec((n_pad, d_pad), lambda i: (0, 0)),    # full x, resident
            pl.BlockSpec((1, n_pad), lambda i: (0, 0)),        # column norms, resident
        ],
        out_specs=pl.BlockSpec((1, 8, 128), lambda i: (i, 0, 0)),
        compiler_params=pltpu.CompilerParams(
            dimension_semantics=("parallel",),
            vmem_limit_bytes=48 * 1024 * 1024,
        ),
    )(x, sq_all)

    partials = out[:, 0, 0]                            # one partial per row block
    return jnp.sum(partials) / jnp.float32(n * n)


def _reference_loss(positions, min_distance=5.0):
    """Pure-JAX reference mirroring the PyTorch forward."""
    diff = positions[:, None, :] - positions[None, :, :]
    dist = jnp.sqrt(jnp.maximum(jnp.sum(diff * diff, axis=-1), 0.0))
    n = positions.shape[0]
    dist = jnp.where(jnp.eye(n, dtype=bool), jnp.inf, dist)
    viol = jax.nn.relu(min_distance - dist)
    return jnp.sum(viol) / (n * n)


if __name__ == "__main__":
    k1, k2, k3 = jax.random.split(jax.random.PRNGKey(0), 3)
    min_distance = 5.0

    # Case 1: N=16 points in 3-D (single row block, no padding).
    pos1 = jax.random.normal(k1, (16, 3), dtype=jnp.float32) * 4.0
    got1 = jax.block_until_ready(repulsion_loss(pos1, min_distance))
    ref1 = jax.block_until_ready(_reference_loss(pos1, min_distance))
    assert jnp.allclose(got1, ref1, rtol=1e-3, atol=1e-3), (got1, ref1)

    # Case 2: N=20 (sentinel padding) with TM=8 -> 3 row blocks, parallel grid.
    pos2 = jax.random.normal(k2, (20, 3), dtype=jnp.float32) * 4.0
    got2 = jax.block_until_ready(
        repulsion_loss(pos2, min_distance, block_rows=8)
    )
    ref2 = jax.block_until_ready(_reference_loss(pos2, min_distance))
    assert jnp.allclose(got2, ref2, rtol=1e-3, atol=1e-3), (got2, ref2)

    # Case 3: N=300 -> 2 row blocks of TM=256 with 212 sentinel rows.
    pos3 = jax.random.normal(k3, (300, 3), dtype=jnp.float32) * 4.0
    got3 = jax.block_until_ready(repulsion_loss(pos3, min_distance))
    ref3 = jax.block_until_ready(_reference_loss(pos3, min_distance))
    assert jnp.allclose(got3, ref3, rtol=1e-3, atol=1e-3), (got3, ref3)

    print("KERNEL_OK")
</pallas_src>

<mosaic_0001>
module attributes {stable_mosaic.version = 11 : i64} {
  func.func @_repulsion_kernel(%arg0: i32, %arg1: memref<16x8xf32, #tpu.memory_space<vmem>>, %arg2: memref<1x16xf32, #tpu.memory_space<vmem>>, %arg3: memref<1x8x128xf32, #tpu.memory_space<vmem>>) attributes {dimension_semantics = [#tpu.dimension_semantics<parallel>], iteration_bounds = array<i64: 1>, scalar_prefetch = 0 : i64, scratch_operands = 0 : i64, tpu.core_type = #tpu.core_type<tc>, window_params = [{pipeline_mode = #tpu.pipeline_mode<synchronous>, transform_indices = @transform_0, window_bounds = array<i64: 16, 8>}, {pipeline_mode = #tpu.pipeline_mode<synchronous>, transform_indices = @transform_1, window_bounds = array<i64: 1, 16>}, {transform_indices = @transform_2, window_bounds = array<i64: 1, 8, 128>}]} {
    %c16_i32 = arith.constant 16 : i32
    %0 = arith.muli %arg0, %c16_i32 : i32
    %1 = tpu.assume_multiple %0, 16 : i32
    %2 = arith.index_cast %1 : i32 to index
    %c0 = arith.constant 0 : index
    %3 = vector.load %arg1[%2, %c0] : memref<16x8xf32, #tpu.memory_space<vmem>>, vector<16x8xf32>
    %c0_0 = arith.constant 0 : index
    %c0_1 = arith.constant 0 : index
    %4 = vector.load %arg1[%c0_0, %c0_1] : memref<16x8xf32, #tpu.memory_space<vmem>>, vector<16x8xf32>
    %5 = arith.mulf %3, %3 : vector<16x8xf32>
    %cst = arith.constant dense<0.000000e+00> : vector<16xf32>
    %6 = vector.multi_reduction <add>, %5, %cst [1] : vector<16x8xf32> to vector<16xf32>
    %7 = vector.shape_cast %6 : vector<16xf32> to vector<16x1xf32>
    %cst_2 = arith.constant dense<0.000000e+00> : vector<16x16xf32>
    %8 = tpu.matmul %3, %4, %cst_2 {dimension_numbers = #tpu.dot_dimension_numbers<[1], [1], [0], [0], [0, 0, 1, 0], [], []>} : vector<16x8xf32>, vector<16x8xf32>, vector<16x16xf32> -> vector<16x16xf32>
    %c0_3 = arith.constant 0 : index
    %c0_4 = arith.constant 0 : index
    %9 = vector.load %arg2[%c0_3, %c0_4] : memref<1x16xf32, #tpu.memory_space<vmem>>, vector<1x16xf32>
    %10 = vector.broadcast %7 : vector<16x1xf32> to vector<16x16xf32>
    %11 = vector.broadcast %9 : vector<1x16xf32> to vector<16x16xf32>
    %12 = arith.addf %10, %11 : vector<16x16xf32>
    %cst_5 = arith.constant 2.000000e+00 : f32
    %13 = vector.broadcast %cst_5 : f32 to vector<16x16xf32>
    %14 = arith.mulf %13, %8 : vector<16x16xf32>
    %15 = arith.subf %12, %14 : vector<16x16xf32>
    %cst_6 = arith.constant 0.000000e+00 : f32
    %16 = vector.broadcast %cst_6 : f32 to vector<16x16xf32>
    %17 = arith.maximumf %15, %16 : vector<16x16xf32>
    %18 = math.sqrt %17 : vector<16x16xf32>
    %cst_7 = arith.constant 5.000000e+00 : f32
    %19 = vector.broadcast %cst_7 : f32 to vector<16x16xf32>
    %20 = arith.subf %19, %18 : vector<16x16xf32>
    %cst_8 = arith.constant 0.000000e+00 : f32
    %21 = vector.broadcast %cst_8 : f32 to vector<16x16xf32>
    %22 = arith.maximumf %20, %21 : vector<16x16xf32>
    %23 = tpu.iota {dimensions = array<i32: 0>} : vector<16x16xi32>
    %c16_i32_9 = arith.constant 16 : i32
    %24 = arith.muli %arg0, %c16_i32_9 : i32
    %25 = vector.broadcast %24 : i32 to vector<16x16xi32>
    %26 = arith.addi %23, %25 : vector<16x16xi32>
    %27 = tpu.iota {dimensions = array<i32: 1>} : vector<16x16xi32>
    %28 = arith.cmpi eq, %26, %27 : vector<16x16xi32>
    %cst_10 = arith.constant 0.000000e+00 : f32
    %29 = vector.broadcast %cst_10 : f32 to vector<16x16xf32>
    %30 = arith.select %28, %29, %22 : vector<16x16xi1>, vector<16x16xf32>
    %31 = vector.shape_cast %30 : vector<16x16xf32> to vector<1x16x16xf32>
    %cst_11 = arith.constant dense<0.000000e+00> : vector<1xf32>
    %32 = vector.multi_reduction <add>, %31, %cst_11 [1, 2] : vector<1x16x16xf32> to vector<1xf32>
    %33 = vector.shape_cast %32 : vector<1xf32> to vector<1x1x1xf32>
    %34 = vector.extract %33[0, 0, 0] : f32 from vector<1x1x1xf32>
    %35 = vector.broadcast %34 : f32 to vector<1x8x128xf32>
    %c0_12 = arith.constant 0 : index
    %c0_13 = arith.constant 0 : index
    %c0_14 = arith.constant 0 : index
    %36 = vector.load %arg3[%c0_12, %c0_13, %c0_14] : memref<1x8x128xf32, #tpu.memory_space<vmem>>, vector<1x8x128xf32>
    tpu.vector_store %arg3[%c0_12, %c0_13, %c0_14], %35 {strides = array<i32>} : memref<1x8x128xf32, #tpu.memory_space<vmem>>, vector<1x8x128xf32>,
    return
  }
  func.func @transform_0(%arg0: i32) -> (i32, i32) {
    %c0_i32 = arith.constant 0 : i32
    %c0_i32_0 = arith.constant 0 : i32
    %c0_i32_1 = arith.constant 0 : i32
    return %c0_i32, %c0_i32_0 : i32, i32
  }
  func.func @transform_1(%arg0: i32) -> (i32, i32) {
    %c0_i32 = arith.constant 0 : i32
    %c0_i32_0 = arith.constant 0 : i32
    %c0_i32_1 = arith.constant 0 : i32
    return %c0_i32, %c0_i32_0 : i32, i32
  }
  func.func @transform_2(%arg0: i32) -> (i32, i32, i32) {
    %c0_i32 = arith.constant 0 : i32
    %c0_i32_0 = arith.constant 0 : i32
    %c0_i32_1 = arith.constant 0 : i32
    return %arg0, %c0_i32, %c0_i32_0 : i32, i32, i32
  }
}

</mosaic_0001>

<bundles_post_ra>
// kernel: tpu_custom_call.1
= control target key start
LH: loop header
LB: loop body
LE: loop exit
PB: predicated region body
PF: predicated region fallthrough
CT: control target
= control target key end

     0   :  { %vm20_vm0 = vcmask 64512   ;;  %s278_s0 = inlined_call_operand.vmem [shape: f32[16,8], index: 0, kind: input, shape index: {}]   ;;  %s279_s1 = inlined_call_operand.vmem [shape: f32[1,16], index: 1, kind: input, shape index: {}]   ;;  %s280_s2 = inlined_call_operand.hbm [shape: f32[1,8,128], index: 2, kind: output, shape index: {}]  }
   0x1   :  { %v16_v0 = vld [vmem:[%s278_s0] sm:$0xff]  ;;  %v17_v1 = vld [vmem:[%s278_s0 + $0x8] sm:$0xff]  ;;  %vm205_vm1 = vmpackc.low %vm20_vm0, %vm20_vm0 }
   0x2   :  { %v204_v2 = vpack.c.bf16 %v17_v1, %v16_v0  ;;  %v18_v3 = vmul.f32 %v16_v0, %v16_v0  ;;  %201 = vmatprep.mubr.msk.f32.mxu0 %vm20_vm0, %v16_v0  ;;  %v19_v4 = vmul.f32 %v17_v1, %v17_v1 }
   0x3   :  { %7 = vsyncpa [#allocation3], 0  ;;  %v192_v9 = vld [vmem:[%s279_s1] ss:$0 sm:$0xff]  ;;  %v147_v20 = vlaneseq  ;;  %vm159_vm8 = vcmask 130048   ;;  %s241_s0 = smov [#allocation2]  }
   0x4   :  { %206 = vmatprep.subr.msk.bf16.mxu0 %vm205_vm1, %v204_v2  ;;  %v21_v5 = vsel %vm20_vm0, %v18_v3, 0.0  ;;  %v24_v6 = vsel %vm20_vm0, %v19_v4, 0.0  ;;  %s180_s1 = sshll.u32 %s241_s0, 4  ;;  %s181_s1 = int_to_ptr.vmem [resolvable:$true] %s180_s1 }
   0x5   :  { %209 = vmatpush3.bf16.xpose.msk.msra.mxu0 %vm205_vm1, %v204_v2  ;;  %22 = vadd.xlane.f32.xlu0 %v21_v5  ;;  %v148_v21 = vshrl.u32 %v147_v20, 7  ;;  %v154_v28 = vand.u32 127, %v147_v20  ;;  %s217_s16 = scalar_lea.vmem %s181_s1, 128  ;;  %p222_p1 = scmp.lt.s32.totalorder %s181_s1, %s181_s1 }
   0x6   :  { %p218_p0 = scmp.ne.s32.totalorder %s181_s1, %s217_s16  ;;  %p223_p2 = scmp.lt.s32.totalorder %s217_s16, %s217_s16 }
   0x7   :  { %v149_v25 = vadd.s32 8, %v148_v21  ;;  %vm155_vm7 = vcmp.eq.s32.totalorder %v148_v21, %v154_v28 }
   0x8   :  { %p224_p3 = por %p223_p2, %p222_p1 }
   0x9   :  { %25 = vadd.xlane.f32.xlu0 %v24_v6  ;;  %vm156_vm6 = vcmp.eq.s32.totalorder %v149_v25, %v154_v28 }
   0xa   :  { %p225_p4 = pnand %p224_p3, %p218_p0 }
   0xc   :  { %202 = vmatmul.mubr.msk.f32.vlgmr.msra.gmra.mrb[0].mxu0 %vm20_vm0, %v17_v1 }
  0x92   :  { %v23_v7 = vpop.xlane.xlu0 %22 }
  0x93   :  { %v121_v14 = vadd.f32 %v192_v9, %v23_v7 }
  0x96   :  { %v26_v8 = vpop.xlane.xlu0 %25 }
  0x97   :  { %v122_v10 = vadd.f32 %v192_v9, %v26_v8 }
  0xdf   :  { %v203_v11 = vpop.f32.mrb[0].mxu0 }
  0xe0   :  { %v124_v12 = vmul.f32 2.0, %v203_v11  ;;  %v105_v13 = vpop.f32.mrb[1].mxu0 }
  0xe1   :  { %v123_v15 = vmul.f32 2.0, %v105_v13 }
  0xe2   :  { %v126_v16 = vsub.f32 %v122_v10, %v124_v12 }
  0xe3   :  { %v125_v17 = vsub.f32 %v121_v14, %v123_v15 }
  0xe4   :  { %v128_v18 = vmax.f32 %v126_v16, 0.0 }
  0xe5   :  { %v127_v19 = vmax.f32 %v125_v17, 0.0 }
  0xe6   :  { %213 = vrsqrt.f32 %v128_v18  ;;  %vm138_vm2 = vcmp.eq.f32.partialorder %v128_v18, inf  ;;  %v141_v27 = vand.u32 2147483648, %v128_v18  ;;  %vm140_vm4 = vcmp.eq.f32.partialorder %v128_v18, 0.0 }
  0xe7   :  { %215 = vrsqrt.f32 %v127_v19  ;;  %vm131_vm3 = vcmp.eq.f32.partialorder %v127_v19, inf  ;;  %v134_v29 = vand.u32 2147483648, %v127_v19  ;;  %vm133_vm5 = vcmp.eq.f32.partialorder %v127_v19, 0.0 }
  0xf0   :  { %v214_v22 = vpop.eup %213 }
  0xf1   :  { %v216_v23 = vpop.eup %215  ;;  %v137_v24 = vmul.f32 %v214_v22, %v128_v18 }
  0xf2   :  { %v130_v26 = vmul.f32 %v216_v23, %v127_v19 }
  0xf3   :  { %v139_v30 = vsel %vm138_vm2, %v128_v18, %v137_v24 }
  0xf4   :  { %v132_v31 = vsel %vm131_vm3, %v127_v19, %v130_v26  ;;  %v142_v32 = vsel %vm140_vm4, %v141_v27, %v139_v30 }
  0xf5   :  { %v135_v33 = vsel %vm133_vm5, %v134_v29, %v132_v31  ;;  %v144_v34 = vsub.f32 5.0, %v142_v32 }
  0xf6   :  { %v143_v35 = vsub.f32 5.0, %v135_v33 }
  0xf7   :  { %v146_v36 = vmax.f32 %v144_v34, 0.0 }
  0xf8   :  { %v145_v37 = vmax.f32 %v143_v35, 0.0 }
  0xf9   :  { %v158_v38 = vsel %vm156_vm6, 0.0, %v146_v36 }
  0xfa   :  { %v157_v39 = vsel %vm155_vm7, 0.0, %v145_v37  ;;  %v161_v40 = vsel %vm159_vm8, %v158_v38, 0.0 }
  0xfb   :  { %v160_v41 = vsel %vm159_vm8, %v157_v39, 0.0 }
  0xfc   :  { %v162_v42 = vadd.f32 %v161_v40, %v160_v41 }
  0xfe   :  { %163 = vadd.xlane.f32.xlu1 %v162_v42 }
 0x18b   :  { %v164_v43 = vpop.xlane.xlu1 %163 }
 0x18c   :  { %v165_v44 = vrot.slane %v164_v43, 4 }
 0x18e   :  { %v166_v45 = vadd.f32 %v165_v44, %v164_v43 }
 0x190   :  { %v167_v46 = vrot.slane %v166_v45, 2 }
 0x192   :  { %v168_v47 = vadd.f32 %v167_v46, %v166_v45 }
 0x194   :  { %v169_v48 = vrot.slane %v168_v47, 1 }
 0x196   :  { %v170_v49 = vadd.f32 %v169_v48, %v168_v47 }
 0x198   :  { %210 = vpush %v170_v49 }
 0x1c9   :  { %s211_s15 = spop %210 }
 0x1ca   :  { %v172_v50 = vstv %s211_s15 }
 0x1cb   :  { %173 = vst [vmem:[#allocation2] sm:$0xff] %v172_v50 }
 0x1cc   :  { %228 = shalt.err (!%p225_p4)
}
 0x1cd   :  { %s229_s19 = scalar_lea.hbm %s280_s2, 128 }
 0x1ce   :  { %p230_p5 = scmp.ne.s32.totalorder %s280_s2, %s229_s19  ;;  %p233_p6 = scmp.lt.u32.totalorder %s229_s19, %s280_s2 }
 0x1d0   :  { %p235_p7 = pnand %p233_p6, %p230_p5 }
 0x1d2   :  { %238 = shalt.err (!%p235_p7)
}
 0x1d3   :  { %183 = dma.vmem_to_hbm [thread:$0]  %s181_s1, 128, %s280_s2, [#allocation3]  }
 0x1d4   :  { %239 = dma.done.wait [#allocation3], 128  }
 0x1d5   :  { %240 = vsyncadd [#allocation3], 4294967168 }
 0x1d6   :  { %187 = vsyncpa [#allocation3], 1 }

</bundles_post_ra>
